<compile_context>
chip_gen: v6e
topology: v6e:2x2x1
jax: 0.10.0
libtpu: 0.0.40
codegen_flags: <defaults>
</compile_context>

<pallas_src>
import functools

import jax
import jax.numpy as jnp
from jax.experimental import pallas as pl
from jax.experimental.pallas import tpu as pltpu


# --------------------------- slab layout helper ----------------------------- #
def _slab_layout(C, K):
    """How taps are packed into the bf16 im2col slab (16-row sublane tiles)."""
    SUB = 16                                   # bf16 sublane tile depth
    KK = K * K
    if C % SUB == 0:
        G, block_rows = 1, C                   # channels already tile-aligned
    elif SUB % C == 0:
        G, block_rows = SUB // C, SUB          # pack G taps per full 16-row block
    else:
        G, block_rows = 1, ((C + SUB - 1) // SUB) * SUB
    n_blocks = (KK + G - 1) // G
    return G, block_rows, n_blocks


# ------------------------------ Pallas kernel ------------------------------- #
def _preblock_kernel(H, W, C, K, G, block_rows, n_blocks,
                     x_ref, w1_ref, b1_ref, w2_ref, b2_ref,
                     wca1_ref, bca1_ref, wca2_ref, bca2_ref,
                     wpa1_ref, bpa1_ref, wpa2_ref, bpa2_ref,
                     out_ref, slab_ref):
    HW = H * W
    KK = K * K
    pad = K // 2

    x = x_ref[...].astype(jnp.float32)                        # (C, HW)

    # ---- per-tap shift offsets + boundary predicates (flat-pixel iota) ----- #
    n_idx = jax.lax.broadcasted_iota(jnp.int32, (1, HW), 1)
    col = n_idx % W

    tap_off = []
    tap_mask = []                                             # (1, HW) f32 | None
    for t in range(KK):
        oy = t // K - pad
        ox = t % K - pad
        valid = None
        if oy < 0:
            valid = n_idx >= (-oy) * W                        # row >= -oy
        elif oy > 0:
            valid = n_idx < (H - oy) * W                      # row <  H - oy
        if ox < 0:
            c = col >= -ox
            valid = c if valid is None else (valid & c)
        elif ox > 0:
            c = col < (W - ox)
            valid = c if valid is None else (valid & c)
        tap_off.append(oy * W + ox)
        tap_mask.append(None if valid is None else valid.astype(jnp.float32))

    # ---- hoist per-block multiplicative masks once (reused by both convs) -- #
    block_masks = []
    for p in range(n_blocks):
        parts = []
        needs_mask = False
        for s in range(G):
            t = p * G + s
            if t >= KK:
                break
            if tap_mask[t] is None:
                parts.append(jnp.ones((C, HW), jnp.float32))  # centre tap: all-valid
            else:
                parts.append(jnp.broadcast_to(tap_mask[t], (C, HW)))
                needs_mask = True
        fill = block_rows - len(parts) * C
        if fill:
            parts.append(jnp.zeros((fill, HW), jnp.float32))
        mask = parts[0] if len(parts) == 1 else jnp.concatenate(parts, axis=0)
        block_masks.append(mask if needs_mask else None)

    def conv_same(feat, w_ref, b_ref):
        # bf16 im2col slab: block p holds taps [p*G, p*G+G) of feat (0 where OOB).
        for p in range(n_blocks):
            parts = []
            for s in range(G):
                t = p * G + s
                if t >= KK:
                    break
                d = tap_off[t]
                parts.append(feat if d == 0
                             else pltpu.roll(feat, shift=(-d) % HW, axis=1))
            fill = block_rows - len(parts) * C
            if fill:
                parts.append(jnp.zeros((fill, HW), jnp.float32))
            blk = parts[0] if len(parts) == 1 else jnp.concatenate(parts, axis=0)
            if block_masks[p] is not None:
                blk = blk * block_masks[p]
            # full (block_rows, HW) bf16 tile store at a 16-aligned row offset
            slab_ref[pl.ds(p * block_rows, block_rows), :] = blk.astype(slab_ref.dtype)
        # single bf16 MXU matmul with f32 accumulation: (C, R) @ (R, HW) -> (C, HW)
        return jnp.dot(w_ref[...], slab_ref[...],
                       preferred_element_type=jnp.float32) + b_ref[...]

    # res = relu(conv1(x)) + x ; res = conv2(res)
    res = jnp.maximum(conv_same(x, w1_ref, b1_ref), 0.0) + x
    res = conv_same(res, w2_ref, b2_ref)

    # CALayer: GAP -> 1x1 (C->8C) -> relu -> 1x1 (8C->C) -> sigmoid -> scale.
    # These matmuls work on a (C, 1) vector; keep them f32 (negligible cost).
    gap = jnp.mean(res, axis=1, keepdims=True)                # (C, 1)
    ca = jnp.maximum(
        jnp.dot(wca1_ref[...], gap, preferred_element_type=jnp.float32)
        + bca1_ref[...], 0.0)                                 # (8C, 1)
    ca = jax.nn.sigmoid(
        jnp.dot(wca2_ref[...], ca, preferred_element_type=jnp.float32)
        + bca2_ref[...])                                      # (C, 1)
    res = res * ca

    # PALayer: bf16 MXU expand (C->8C), then VPU multiply + sublane reduce (8C->1).
    pa = jnp.maximum(
        jnp.dot(wpa1_ref[...], res.astype(jnp.bfloat16),
                preferred_element_type=jnp.float32)
        + bpa1_ref[...], 0.0)                                 # (8C, HW)
    pa = jax.nn.sigmoid(jnp.sum(pa * wpa2_ref[...], axis=0, keepdims=True)
                        + bpa2_ref[...])                      # (1, HW)
    res = res * pa

    out_ref[...] = (res + x).astype(out_ref.dtype)


# --------------------------------- wrapper ----------------------------------- #
def preblock_forward(x_nchw, params, K=3):
    B, C, H, W = x_nchw.shape
    HW = H * W
    G, block_rows, n_blocks = _slab_layout(C, K)
    slab_rows = n_blocks * block_rows
    (w1, b1, w2, b2, wca1, bca1, wca2, bca2, wpa1, bpa1, wpa2, bpa2) = params

    # NCHW -> (B, C, HW): pure reshape, pixels land on the 128-wide lane axis.
    x = x_nchw.reshape(B, C, HW)

    def conv_w(w):   # (K*K, Cin, Cout) -> (Cout, slab_rows) bf16, paired-tap layout
        KK = K * K
        w_t = jnp.transpose(w, (2, 0, 1))                    # (Cout, K*K, Cin)
        out = jnp.zeros((C, slab_rows), jnp.float32)
        for t in range(KK):
            p, s = divmod(t, G)
            r0 = p * block_rows + s * C
            out = out.at[:, r0:r0 + C].set(w_t[:, t, :])
        return out.astype(jnp.bfloat16)

    kparams = (conv_w(w1), b1.T, conv_w(w2), b2.T,
               wca1.T, bca1.T, wca2.T, bca2.T,
               wpa1.T.astype(jnp.bfloat16), bpa1.T, wpa2, bpa2)

    kernel = functools.partial(_preblock_kernel, H, W, C, K, G, block_rows, n_blocks)

    def full(arr):
        shape = arr.shape
        return pl.BlockSpec(shape, lambda b, s=shape: (0,) * len(s))

    # advisory cost estimate (two 3x3 convs + CA + PA, per batch)
    C8 = 8 * C
    flops = B * (4 * C * (K * K * C) * HW          # two im2col conv matmuls
                 + 2 * (C8 * C + C * C8)           # CA 1x1s on (C,1)
                 + 2 * C8 * C * HW + 2 * C8 * HW)  # PA expand + project
    transcendentals = B * (C + HW)                 # sigmoids
    bytes_accessed = int(2 * B * C * HW * 4
                         + sum(int(p.size) * p.dtype.itemsize for p in kparams))

    out = pl.pallas_call(
        kernel,
        out_shape=jax.ShapeDtypeStruct((B, C, HW), x.dtype),
        grid=(B,),
        in_specs=[pl.BlockSpec((None, C, HW), lambda b: (b, 0, 0))]
                 + [full(p) for p in kparams],
        out_specs=pl.BlockSpec((None, C, HW), lambda b: (b, 0, 0)),
        scratch_shapes=[pltpu.VMEM((slab_rows, HW), jnp.bfloat16)],
        compiler_params=pltpu.CompilerParams(dimension_semantics=("parallel",)),
        cost_estimate=pl.CostEstimate(flops=int(flops),
                                      transcendentals=int(transcendentals),
                                      bytes_accessed=bytes_accessed),
    )(x, *kparams)

    return out.reshape(B, C, H, W)


# --------------------------- deterministic parameters ------------------------ #
def init_params(key, C, K):
    ks = jax.random.split(key, 12)

    def u(k, shape, fan_in):
        bound = 1.0 / (fan_in ** 0.5)
        return jax.random.uniform(k, shape, jnp.float32, -bound, bound)

    C8 = C * 8
    w1 = u(ks[0], (K * K, C, C), C * K * K)       # conv1 weight, tap-major (K*K, Cin, Cout)
    b1 = u(ks[1], (1, C), C * K * K)
    w2 = u(ks[2], (K * K, C, C), C * K * K)       # conv2
    b2 = u(ks[3], (1, C), C * K * K)
    wca1 = u(ks[4], (C, C8), C)                   # CA 1x1 convs as matmuls
    bca1 = u(ks[5], (1, C8), C)
    wca2 = u(ks[6], (C8, C), C8)
    bca2 = u(ks[7], (1, C), C8)
    wpa1 = u(ks[8], (C, C8), C)                   # PA 1x1 convs as matmuls
    bpa1 = u(ks[9], (1, C8), C)
    wpa2 = u(ks[10], (C8, 1), C8)
    bpa2 = u(ks[11], (1, 1), C8)
    return (w1, b1, w2, b2, wca1, bca1, wca2, bca2, wpa1, bpa1, wpa2, bpa2)


# --------------------------- pure-JAX reference (check) ---------------------- #
def preblock_ref(x_nchw, params, K=3):
    (w1, b1, w2, b2, wca1, bca1, wca2, bca2, wpa1, bpa1, wpa2, bpa2) = params
    B, C, H, W = x_nchw.shape
    xh = jnp.transpose(x_nchw, (0, 2, 3, 1))  # NHWC

    def conv(feat, w_taps, b):
        rhs = w_taps.reshape(K, K, w_taps.shape[1], w_taps.shape[2])
        y = jax.lax.conv_general_dilated(
            feat, rhs, window_strides=(1, 1), padding="SAME",
            dimension_numbers=("NHWC", "HWIO", "NHWC"))
        return y + b.reshape(1, 1, 1, -1)

    res = jax.nn.relu(conv(xh, w1, b1)) + xh
    res = conv(res, w2, b2)
    gap = jnp.mean(res, axis=(1, 2), keepdims=True)
    ca = jax.nn.relu(gap @ wca1 + bca1)
    ca = jax.nn.sigmoid(ca @ wca2 + bca2)
    res = res * ca
    pa = jax.nn.relu(res @ wpa1 + bpa1)
    pa = jax.nn.sigmoid(pa @ wpa2 + bpa2)
    res = res * pa
    res = res + xh
    return jnp.transpose(res, (0, 3, 1, 2))


# ----------------------------------- main ------------------------------------ #
if __name__ == "__main__":
    B, C, H, W, K = 2, 4, 16, 16, 3

    root = jax.random.PRNGKey(0)
    kx, kp = jax.random.split(root)
    x = jax.random.normal(kx, (B, C, H, W), jnp.float32)
    params = init_params(kp, C, K)

    out = preblock_forward(x, params, K=K)
    out = jax.block_until_ready(out)

    ref = jax.block_until_ready(preblock_ref(x, params, K=K))
    assert out.shape == (B, C, H, W)
    # bf16 MXU operands (f32 accumulate) -> relaxed tolerance vs. the f32 reference.
    if not jnp.allclose(out, ref, atol=3e-2, rtol=3e-2):
        raise AssertionError("Pallas PreBlock kernel does not match JAX reference")

    print("KERNEL_OK")
</pallas_src>

<mosaic_0001>
module attributes {stable_mosaic.version = 11 : i64} {
  func.func @_preblock_kernel(%arg0: i32, %arg1: memref<1x4x256xf32, #tpu.memory_space<vmem>>, %arg2: memref<4x48xbf16, #tpu.memory_space<vmem>>, %arg3: memref<4x1xf32, #tpu.memory_space<vmem>>, %arg4: memref<4x48xbf16, #tpu.memory_space<vmem>>, %arg5: memref<4x1xf32, #tpu.memory_space<vmem>>, %arg6: memref<32x4xf32, #tpu.memory_space<vmem>>, %arg7: memref<32x1xf32, #tpu.memory_space<vmem>>, %arg8: memref<4x32xf32, #tpu.memory_space<vmem>>, %arg9: memref<4x1xf32, #tpu.memory_space<vmem>>, %arg10: memref<32x4xbf16, #tpu.memory_space<vmem>>, %arg11: memref<32x1xf32, #tpu.memory_space<vmem>>, %arg12: memref<32x1xf32, #tpu.memory_space<vmem>>, %arg13: memref<1x1xf32, #tpu.memory_space<vmem>>, %arg14: memref<1x4x256xf32, #tpu.memory_space<vmem>>, %arg15: memref<48x256xbf16, #tpu.memory_space<vmem>>) attributes {dimension_semantics = [#tpu.dimension_semantics<parallel>], iteration_bounds = array<i64: 2>, scalar_prefetch = 0 : i64, scratch_operands = 1 : i64, tpu.core_type = #tpu.core_type<tc>, window_params = [{transform_indices = @transform_0, window_bounds = array<i64: 1, 4, 256>}, {pipeline_mode = #tpu.pipeline_mode<synchronous>, transform_indices = @transform_1, window_bounds = array<i64: 4, 48>}, {pipeline_mode = #tpu.pipeline_mode<synchronous>, transform_indices = @transform_2, window_bounds = array<i64: 4, 1>}, {pipeline_mode = #tpu.pipeline_mode<synchronous>, transform_indices = @transform_3, window_bounds = array<i64: 4, 48>}, {pipeline_mode = #tpu.pipeline_mode<synchronous>, transform_indices = @transform_4, window_bounds = array<i64: 4, 1>}, {pipeline_mode = #tpu.pipeline_mode<synchronous>, transform_indices = @transform_5, window_bounds = array<i64: 32, 4>}, {pipeline_mode = #tpu.pipeline_mode<synchronous>, transform_indices = @transform_6, window_bounds = array<i64: 32, 1>}, {pipeline_mode = #tpu.pipeline_mode<synchronous>, transform_indices = @transform_7, window_bounds = array<i64: 4, 32>}, {pipeline_mode = #tpu.pipeline_mode<synchronous>, transform_indices = @transform_8, window_bounds = array<i64: 4, 1>}, {pipeline_mode = #tpu.pipeline_mode<synchronous>, transform_indices = @transform_9, window_bounds = array<i64: 32, 4>}, {pipeline_mode = #tpu.pipeline_mode<synchronous>, transform_indices = @transform_10, window_bounds = array<i64: 32, 1>}, {pipeline_mode = #tpu.pipeline_mode<synchronous>, transform_indices = @transform_11, window_bounds = array<i64: 32, 1>}, {pipeline_mode = #tpu.pipeline_mode<synchronous>, transform_indices = @transform_12, window_bounds = array<i64: 1, 1>}, {transform_indices = @transform_13, window_bounds = array<i64: 1, 4, 256>}]} {
    %c0 = arith.constant 0 : index
    %c0_0 = arith.constant 0 : index
    %c0_1 = arith.constant 0 : index
    %0 = vector.load %arg1[%c0, %c0_0, %c0_1] : memref<1x4x256xf32, #tpu.memory_space<vmem>>, vector<1x4x256xf32>
    %1 = vector.shape_cast %0 : vector<1x4x256xf32> to vector<4x256xf32>
    %2 = tpu.iota {dimensions = array<i32: 1>} : vector<1x256xi32>
    %c16_i32 = arith.constant 16 : i32
    %c0_i32 = arith.constant 0 : i32
    %3 = arith.cmpi eq, %c16_i32, %c0_i32 : i32
    %c1_i32 = arith.constant 1 : i32
    %4 = arith.select %3, %c1_i32, %c16_i32 : i32
    %5 = vector.broadcast %4 : i32 to vector<1x256xi32>
    %6 = arith.remsi %2, %5 : vector<1x256xi32>
    %c0_i32_2 = arith.constant 0 : i32
    %7 = vector.broadcast %c0_i32_2 : i32 to vector<1x256xi32>
    %8 = arith.cmpi ne, %6, %7 : vector<1x256xi32>
    %c0_i32_3 = arith.constant 0 : i32
    %9 = vector.broadcast %c0_i32_3 : i32 to vector<1x256xi32>
    %10 = arith.cmpi slt, %6, %9 : vector<1x256xi32>
    %c0_i32_4 = arith.constant 0 : i32
    %11 = arith.cmpi slt, %4, %c0_i32_4 : i32
    %12 = vector.broadcast %11 : i1 to vector<1x256xi1>
    %13 = vector.broadcast %12 : vector<1x256xi1> to vector<1x256xi1>
    %14 = arith.xori %10, %13 : vector<1x256xi1>
    %15 = arith.andi %14, %8 : vector<1x256xi1>
    %16 = vector.broadcast %4 : i32 to vector<1x256xi32>
    %17 = arith.addi %6, %16 : vector<1x256xi32>
    %18 = arith.select %15, %17, %6 : vector<1x256xi1>, vector<1x256xi32>
    %c16_i32_5 = arith.constant 16 : i32
    %19 = vector.broadcast %c16_i32_5 : i32 to vector<1x256xi32>
    %20 = arith.cmpi sge, %2, %19 : vector<1x256xi32>
    %c1_i32_6 = arith.constant 1 : i32
    %21 = vector.broadcast %c1_i32_6 : i32 to vector<1x256xi32>
    %22 = arith.cmpi sge, %18, %21 : vector<1x256xi32>
    %23 = arith.andi %20, %22 : vector<1x256xi1>
    %24 = arith.extui %23 : vector<1x256xi1> to vector<1x256xi32>
    %25 = arith.sitofp %24 : vector<1x256xi32> to vector<1x256xf32>
    %c16_i32_7 = arith.constant 16 : i32
    %26 = vector.broadcast %c16_i32_7 : i32 to vector<1x256xi32>
    %27 = arith.cmpi sge, %2, %26 : vector<1x256xi32>
    %28 = arith.extui %27 : vector<1x256xi1> to vector<1x256xi32>
    %29 = arith.sitofp %28 : vector<1x256xi32> to vector<1x256xf32>
    %c16_i32_8 = arith.constant 16 : i32
    %30 = vector.broadcast %c16_i32_8 : i32 to vector<1x256xi32>
    %31 = arith.cmpi sge, %2, %30 : vector<1x256xi32>
    %c15_i32 = arith.constant 15 : i32
    %32 = vector.broadcast %c15_i32 : i32 to vector<1x256xi32>
    %33 = arith.cmpi slt, %18, %32 : vector<1x256xi32>
    %34 = arith.andi %31, %33 : vector<1x256xi1>
    %35 = arith.extui %34 : vector<1x256xi1> to vector<1x256xi32>
    %36 = arith.sitofp %35 : vector<1x256xi32> to vector<1x256xf32>
    %c1_i32_9 = arith.constant 1 : i32
    %37 = vector.broadcast %c1_i32_9 : i32 to vector<1x256xi32>
    %38 = arith.cmpi sge, %18, %37 : vector<1x256xi32>
    %39 = arith.extui %38 : vector<1x256xi1> to vector<1x256xi32>
    %40 = arith.sitofp %39 : vector<1x256xi32> to vector<1x256xf32>
    %c15_i32_10 = arith.constant 15 : i32
    %41 = vector.broadcast %c15_i32_10 : i32 to vector<1x256xi32>
    %42 = arith.cmpi slt, %18, %41 : vector<1x256xi32>
    %43 = arith.extui %42 : vector<1x256xi1> to vector<1x256xi32>
    %44 = arith.sitofp %43 : vector<1x256xi32> to vector<1x256xf32>
    %c240_i32 = arith.constant 240 : i32
    %45 = vector.broadcast %c240_i32 : i32 to vector<1x256xi32>
    %46 = arith.cmpi slt, %2, %45 : vector<1x256xi32>
    %c1_i32_11 = arith.constant 1 : i32
    %47 = vector.broadcast %c1_i32_11 : i32 to vector<1x256xi32>
    %48 = arith.cmpi sge, %18, %47 : vector<1x256xi32>
    %49 = arith.andi %46, %48 : vector<1x256xi1>
    %50 = arith.extui %49 : vector<1x256xi1> to vector<1x256xi32>
    %51 = arith.sitofp %50 : vector<1x256xi32> to vector<1x256xf32>
    %c240_i32_12 = arith.constant 240 : i32
    %52 = vector.broadcast %c240_i32_12 : i32 to vector<1x256xi32>
    %53 = arith.cmpi slt, %2, %52 : vector<1x256xi32>
    %54 = arith.extui %53 : vector<1x256xi1> to vector<1x256xi32>
    %55 = arith.sitofp %54 : vector<1x256xi32> to vector<1x256xf32>
    %c240_i32_13 = arith.constant 240 : i32
    %56 = vector.broadcast %c240_i32_13 : i32 to vector<1x256xi32>
    %57 = arith.cmpi slt, %2, %56 : vector<1x256xi32>
    %c15_i32_14 = arith.constant 15 : i32
    %58 = vector.broadcast %c15_i32_14 : i32 to vector<1x256xi32>
    %59 = arith.cmpi slt, %18, %58 : vector<1x256xi32>
    %60 = arith.andi %57, %59 : vector<1x256xi1>
    %61 = arith.extui %60 : vector<1x256xi1> to vector<1x256xi32>
    %62 = arith.sitofp %61 : vector<1x256xi32> to vector<1x256xf32>
    %63 = vector.shape_cast %25 : vector<1x256xf32> to vector<1x256xf32>
    %64 = vector.broadcast %63 : vector<1x256xf32> to vector<4x256xf32>
    %65 = vector.shape_cast %29 : vector<1x256xf32> to vector<1x256xf32>
    %66 = vector.broadcast %65 : vector<1x256xf32> to vector<4x256xf32>
    %67 = vector.shape_cast %36 : vector<1x256xf32> to vector<1x256xf32>
    %68 = vector.broadcast %67 : vector<1x256xf32> to vector<4x256xf32>
    %69 = vector.shape_cast %40 : vector<1x256xf32> to vector<1x256xf32>
    %70 = vector.broadcast %69 : vector<1x256xf32> to vector<4x256xf32>
    %71 = tpu.concatenate %64, %66, %68, %70 in 0 : vector<4x256xf32>, vector<4x256xf32>, vector<4x256xf32>, vector<4x256xf32> -> vector<16x256xf32>
    %cst = arith.constant 1.000000e+00 : f32
    %72 = vector.broadcast %cst : f32 to vector<4x256xf32>
    %73 = vector.shape_cast %44 : vector<1x256xf32> to vector<1x256xf32>
    %74 = vector.broadcast %73 : vector<1x256xf32> to vector<4x256xf32>
    %75 = vector.shape_cast %51 : vector<1x256xf32> to vector<1x256xf32>
    %76 = vector.broadcast %75 : vector<1x256xf32> to vector<4x256xf32>
    %77 = vector.shape_cast %55 : vector<1x256xf32> to vector<1x256xf32>
    %78 = vector.broadcast %77 : vector<1x256xf32> to vector<4x256xf32>
    %79 = tpu.concatenate %72, %74, %76, %78 in 0 : vector<4x256xf32>, vector<4x256xf32>, vector<4x256xf32>, vector<4x256xf32> -> vector<16x256xf32>
    %80 = vector.shape_cast %62 : vector<1x256xf32> to vector<1x256xf32>
    %81 = vector.broadcast %80 : vector<1x256xf32> to vector<4x256xf32>
    %cst_15 = arith.constant 0.000000e+00 : f32
    %82 = vector.broadcast %cst_15 : f32 to vector<12x256xf32>
    %83 = tpu.concatenate %81, %82 in 0 : vector<4x256xf32>, vector<12x256xf32> -> vector<16x256xf32>
    %c17_i32 = arith.constant 17 : i32
    %84 = tpu.dynamic_rotate %1 by %c17_i32 dim 1 : vector<4x256xf32>, i32 -> vector<4x256xf32>
    %c16_i32_16 = arith.constant 16 : i32
    %85 = tpu.dynamic_rotate %1 by %c16_i32_16 dim 1 : vector<4x256xf32>, i32 -> vector<4x256xf32>
    %c15_i32_17 = arith.constant 15 : i32
    %86 = tpu.dynamic_rotate %1 by %c15_i32_17 dim 1 : vector<4x256xf32>, i32 -> vector<4x256xf32>
    %c1_i32_18 = arith.constant 1 : i32
    %87 = tpu.dynamic_rotate %1 by %c1_i32_18 dim 1 : vector<4x256xf32>, i32 -> vector<4x256xf32>
    %88 = tpu.concatenate %84, %85, %86, %87 in 0 : vector<4x256xf32>, vector<4x256xf32>, vector<4x256xf32>, vector<4x256xf32> -> vector<16x256xf32>
    %89 = arith.mulf %88, %71 : vector<16x256xf32>
    %90 = arith.truncf %89 : vector<16x256xf32> to vector<16x256xbf16>
    %c0_19 = arith.constant 0 : index
    %c0_20 = arith.constant 0 : index
    %91 = vector.load %arg15[%c0_19, %c0_20] : memref<48x256xbf16, #tpu.memory_space<vmem>>, vector<16x256xbf16>
    tpu.vector_store %arg15[%c0_19, %c0_20], %90 {strides = array<i32>} : memref<48x256xbf16, #tpu.memory_space<vmem>>, vector<16x256xbf16>,
    %c255_i32 = arith.constant 255 : i32
    %92 = tpu.dynamic_rotate %1 by %c255_i32 dim 1 : vector<4x256xf32>, i32 -> vector<4x256xf32>
    %c241_i32 = arith.constant 241 : i32
    %93 = tpu.dynamic_rotate %1 by %c241_i32 dim 1 : vector<4x256xf32>, i32 -> vector<4x256xf32>
    %c240_i32_21 = arith.constant 240 : i32
    %94 = tpu.dynamic_rotate %1 by %c240_i32_21 dim 1 : vector<4x256xf32>, i32 -> vector<4x256xf32>
    %95 = tpu.concatenate %1, %92, %93, %94 in 0 : vector<4x256xf32>, vector<4x256xf32>, vector<4x256xf32>, vector<4x256xf32> -> vector<16x256xf32>
    %96 = arith.mulf %95, %79 : vector<16x256xf32>
    %97 = arith.truncf %96 : vector<16x256xf32> to vector<16x256xbf16>
    %c16 = arith.constant 16 : index
    %c0_22 = arith.constant 0 : index
    %98 = vector.load %arg15[%c16, %c0_22] : memref<48x256xbf16, #tpu.memory_space<vmem>>, vector<16x256xbf16>
    tpu.vector_store %arg15[%c16, %c0_22], %97 {strides = array<i32>} : memref<48x256xbf16, #tpu.memory_space<vmem>>, vector<16x256xbf16>,
    %c239_i32 = arith.constant 239 : i32
    %99 = tpu.dynamic_rotate %1 by %c239_i32 dim 1 : vector<4x256xf32>, i32 -> vector<4x256xf32>
    %cst_23 = arith.constant 0.000000e+00 : f32
    %100 = vector.broadcast %cst_23 : f32 to vector<12x256xf32>
    %101 = tpu.concatenate %99, %100 in 0 : vector<4x256xf32>, vector<12x256xf32> -> vector<16x256xf32>
    %102 = arith.mulf %101, %83 : vector<16x256xf32>
    %103 = arith.truncf %102 : vector<16x256xf32> to vector<16x256xbf16>
    %c32 = arith.constant 32 : index
    %c0_24 = arith.constant 0 : index
    %104 = vector.load %arg15[%c32, %c0_24] : memref<48x256xbf16, #tpu.memory_space<vmem>>, vector<16x256xbf16>
    tpu.vector_store %arg15[%c32, %c0_24], %103 {strides = array<i32>} : memref<48x256xbf16, #tpu.memory_space<vmem>>, vector<16x256xbf16>,
    %c0_25 = arith.constant 0 : index
    %c0_26 = arith.constant 0 : index
    %105 = vector.load %arg2[%c0_25, %c0_26] : memref<4x48xbf16, #tpu.memory_space<vmem>>, vector<4x48xbf16>
    %c0_27 = arith.constant 0 : index
    %c0_28 = arith.constant 0 : index
    %106 = vector.load %arg15[%c0_27, %c0_28] : memref<48x256xbf16, #tpu.memory_space<vmem>>, vector<48x256xbf16>
    %cst_29 = arith.constant dense<0.000000e+00> : vector<4x256xf32>
    %107 = tpu.matmul %105, %106, %cst_29 {dimension_numbers = #tpu.dot_dimension_numbers<[1], [0], [0], [1], [0, 0, 1, 1], [], []>} : vector<4x48xbf16>, vector<48x256xbf16>, vector<4x256xf32> -> vector<4x256xf32>
    %c0_30 = arith.constant 0 : index
    %c0_31 = arith.constant 0 : index
    %108 = vector.load %arg3[%c0_30, %c0_31] : memref<4x1xf32, #tpu.memory_space<vmem>>, vector<4x1xf32>
    %109 = vector.broadcast %108 : vector<4x1xf32> to vector<4x256xf32>
    %110 = arith.addf %107, %109 : vector<4x256xf32>
    %cst_32 = arith.constant 0.000000e+00 : f32
    %111 = vector.broadcast %cst_32 : f32 to vector<4x256xf32>
    %112 = arith.maximumf %110, %111 : vector<4x256xf32>
    %113 = arith.addf %112, %1 : vector<4x256xf32>
    %c17_i32_33 = arith.constant 17 : i32
    %114 = tpu.dynamic_rotate %113 by %c17_i32_33 dim 1 : vector<4x256xf32>, i32 -> vector<4x256xf32>
    %c16_i32_34 = arith.constant 16 : i32
    %115 = tpu.dynamic_rotate %113 by %c16_i32_34 dim 1 : vector<4x256xf32>, i32 -> vector<4x256xf32>
    %c15_i32_35 = arith.constant 15 : i32
    %116 = tpu.dynamic_rotate %113 by %c15_i32_35 dim 1 : vector<4x256xf32>, i32 -> vector<4x256xf32>
    %c1_i32_36 = arith.constant 1 : i32
    %117 = tpu.dynamic_rotate %113 by %c1_i32_36 dim 1 : vector<4x256xf32>, i32 -> vector<4x256xf32>
    %118 = tpu.concatenate %114, %115, %116, %117 in 0 : vector<4x256xf32>, vector<4x256xf32>, vector<4x256xf32>, vector<4x256xf32> -> vector<16x256xf32>
    %119 = arith.mulf %118, %71 : vector<16x256xf32>
    %120 = arith.truncf %119 : vector<16x256xf32> to vector<16x256xbf16>
    %c0_37 = arith.constant 0 : index
    %c0_38 = arith.constant 0 : index
    %121 = vector.load %arg15[%c0_37, %c0_38] : memref<48x256xbf16, #tpu.memory_space<vmem>>, vector<16x256xbf16>
    tpu.vector_store %arg15[%c0_37, %c0_38], %120 {strides = array<i32>} : memref<48x256xbf16, #tpu.memory_space<vmem>>, vector<16x256xbf16>,
    %c255_i32_39 = arith.constant 255 : i32
    %122 = tpu.dynamic_rotate %113 by %c255_i32_39 dim 1 : vector<4x256xf32>, i32 -> vector<4x256xf32>
    %c241_i32_40 = arith.constant 241 : i32
    %123 = tpu.dynamic_rotate %113 by %c241_i32_40 dim 1 : vector<4x256xf32>, i32 -> vector<4x256xf32>
    %c240_i32_41 = arith.constant 240 : i32
    %124 = tpu.dynamic_rotate %113 by %c240_i32_41 dim 1 : vector<4x256xf32>, i32 -> vector<4x256xf32>
    %125 = tpu.concatenate %113, %122, %123, %124 in 0 : vector<4x256xf32>, vector<4x256xf32>, vector<4x256xf32>, vector<4x256xf32> -> vector<16x256xf32>
    %126 = arith.mulf %125, %79 : vector<16x256xf32>
    %127 = arith.truncf %126 : vector<16x256xf32> to vector<16x256xbf16>
    %c16_42 = arith.constant 16 : index
    %c0_43 = arith.constant 0 : index
    %128 = vector.load %arg15[%c16_42, %c0_43] : memref<48x256xbf16, #tpu.memory_space<vmem>>, vector<16x256xbf16>
    tpu.vector_store %arg15[%c16_42, %c0_43], %127 {strides = array<i32>} : memref<48x256xbf16, #tpu.memory_space<vmem>>, vector<16x256xbf16>,
    %c239_i32_44 = arith.constant 239 : i32
    %129 = tpu.dynamic_rotate %113 by %c239_i32_44 dim 1 : vector<4x256xf32>, i32 -> vector<4x256xf32>
    %cst_45 = arith.constant 0.000000e+00 : f32
    %130 = vector.broadcast %cst_45 : f32 to vector<12x256xf32>
    %131 = tpu.concatenate %129, %130 in 0 : vector<4x256xf32>, vector<12x256xf32> -> vector<16x256xf32>
    %132 = arith.mulf %131, %83 : vector<16x256xf32>
    %133 = arith.truncf %132 : vector<16x256xf32> to vector<16x256xbf16>
    %c32_46 = arith.constant 32 : index
    %c0_47 = arith.constant 0 : index
    %134 = vector.load %arg15[%c32_46, %c0_47] : memref<48x256xbf16, #tpu.memory_space<vmem>>, vector<16x256xbf16>
    tpu.vector_store %arg15[%c32_46, %c0_47], %133 {strides = array<i32>} : memref<48x256xbf16, #tpu.memory_space<vmem>>, vector<16x256xbf16>,
    %c0_48 = arith.constant 0 : index
    %c0_49 = arith.constant 0 : index
    %135 = vector.load %arg4[%c0_48, %c0_49] : memref<4x48xbf16, #tpu.memory_space<vmem>>, vector<4x48xbf16>
    %c0_50 = arith.constant 0 : index
    %c0_51 = arith.constant 0 : index
    %136 = vector.load %arg15[%c0_50, %c0_51] : memref<48x256xbf16, #tpu.memory_space<vmem>>, vector<48x256xbf16>
    %cst_52 = arith.constant dense<0.000000e+00> : vector<4x256xf32>
    %137 = tpu.matmul %135, %136, %cst_52 {dimension_numbers = #tpu.dot_dimension_numbers<[1], [0], [0], [1], [0, 0, 1, 1], [], []>} : vector<4x48xbf16>, vector<48x256xbf16>, vector<4x256xf32> -> vector<4x256xf32>
    %c0_53 = arith.constant 0 : index
    %c0_54 = arith.constant 0 : index
    %138 = vector.load %arg5[%c0_53, %c0_54] : memref<4x1xf32, #tpu.memory_space<vmem>>, vector<4x1xf32>
    %139 = vector.broadcast %138 : vector<4x1xf32> to vector<4x256xf32>
    %140 = arith.addf %137, %139 : vector<4x256xf32>
    %cst_55 = arith.constant dense<0.000000e+00> : vector<4xf32>
    %141 = vector.multi_reduction <add>, %140, %cst_55 [1] : vector<4x256xf32> to vector<4xf32>
    %142 = vector.shape_cast %141 : vector<4xf32> to vector<4x1xf32>
    %cst_56 = arith.constant 2.560000e+02 : f32
    %143 = vector.broadcast %cst_56 : f32 to vector<4x1xf32>
    %144 = arith.divf %142, %143 : vector<4x1xf32>
    %c0_57 = arith.constant 0 : index
    %c0_58 = arith.constant 0 : index
    %145 = vector.load %arg6[%c0_57, %c0_58] : memref<32x4xf32, #tpu.memory_space<vmem>>, vector<32x4xf32>
    %cst_59 = arith.constant dense<0.000000e+00> : vector<32x1xf32>
    %146 = tpu.matmul %145, %144, %cst_59 {dimension_numbers = #tpu.dot_dimension_numbers<[1], [0], [0], [1], [0, 0, 1, 1], [], []>} : vector<32x4xf32>, vector<4x1xf32>, vector<32x1xf32> -> vector<32x1xf32>
    %c0_60 = arith.constant 0 : index
    %c0_61 = arith.constant 0 : index
    %147 = vector.load %arg7[%c0_60, %c0_61] : memref<32x1xf32, #tpu.memory_space<vmem>>, vector<32x1xf32>
    %148 = arith.addf %146, %147 : vector<32x1xf32>
    %cst_62 = arith.constant 0.000000e+00 : f32
    %149 = vector.broadcast %cst_62 : f32 to vector<32x1xf32>
    %150 = arith.maximumf %148, %149 : vector<32x1xf32>
    %c0_63 = arith.constant 0 : index
    %c0_64 = arith.constant 0 : index
    %151 = vector.load %arg8[%c0_63, %c0_64] : memref<4x32xf32, #tpu.memory_space<vmem>>, vector<4x32xf32>
    %cst_65 = arith.constant dense<0.000000e+00> : vector<4x1xf32>
    %152 = tpu.matmul %151, %150, %cst_65 {dimension_numbers = #tpu.dot_dimension_numbers<[1], [0], [0], [1], [0, 0, 1, 1], [], []>} : vector<4x32xf32>, vector<32x1xf32>, vector<4x1xf32> -> vector<4x1xf32>
    %c0_66 = arith.constant 0 : index
    %c0_67 = arith.constant 0 : index
    %153 = vector.load %arg9[%c0_66, %c0_67] : memref<4x1xf32, #tpu.memory_space<vmem>>, vector<4x1xf32>
    %154 = arith.addf %152, %153 : vector<4x1xf32>
    %155 = arith.negf %154 : vector<4x1xf32>
    %156 = math.exp %155 : vector<4x1xf32>
    %cst_68 = arith.constant 1.000000e+00 : f32
    %157 = vector.broadcast %cst_68 : f32 to vector<4x1xf32>
    %158 = arith.addf %157, %156 : vector<4x1xf32>
    %159 = arith.divf %157, %158 : vector<4x1xf32>
    %160 = vector.broadcast %159 : vector<4x1xf32> to vector<4x256xf32>
    %161 = arith.mulf %140, %160 : vector<4x256xf32>
    %c0_69 = arith.constant 0 : index
    %c0_70 = arith.constant 0 : index
    %162 = vector.load %arg10[%c0_69, %c0_70] : memref<32x4xbf16, #tpu.memory_space<vmem>>, vector<32x4xbf16>
    %163 = arith.truncf %161 : vector<4x256xf32> to vector<4x256xbf16>
    %cst_71 = arith.constant dense<0.000000e+00> : vector<32x256xf32>
    %164 = tpu.matmul %162, %163, %cst_71 {dimension_numbers = #tpu.dot_dimension_numbers<[1], [0], [0], [1], [0, 0, 1, 1], [], []>} : vector<32x4xbf16>, vector<4x256xbf16>, vector<32x256xf32> -> vector<32x256xf32>
    %c0_72 = arith.constant 0 : index
    %c0_73 = arith.constant 0 : index
    %165 = vector.load %arg11[%c0_72, %c0_73] : memref<32x1xf32, #tpu.memory_space<vmem>>, vector<32x1xf32>
    %166 = vector.broadcast %165 : vector<32x1xf32> to vector<32x256xf32>
    %167 = arith.addf %164, %166 : vector<32x256xf32>
    %cst_74 = arith.constant 0.000000e+00 : f32
    %168 = vector.broadcast %cst_74 : f32 to vector<32x256xf32>
    %169 = arith.maximumf %167, %168 : vector<32x256xf32>
    %c0_75 = arith.constant 0 : index
    %c0_76 = arith.constant 0 : index
    %170 = vector.load %arg12[%c0_75, %c0_76] : memref<32x1xf32, #tpu.memory_space<vmem>>, vector<32x1xf32>
    %171 = vector.broadcast %170 : vector<32x1xf32> to vector<32x256xf32>
    %172 = arith.mulf %169, %171 : vector<32x256xf32>
    %cst_77 = arith.constant dense<0.000000e+00> : vector<256xf32>
    %173 = vector.multi_reduction <add>, %172, %cst_77 [0] : vector<32x256xf32> to vector<256xf32>
    %174 = vector.shape_cast %173 : vector<256xf32> to vector<1x256xf32>
    %c0_78 = arith.constant 0 : index
    %c0_79 = arith.constant 0 : index
    %175 = vector.load %arg13[%c0_78, %c0_79] : memref<1x1xf32, #tpu.memory_space<vmem>>, vector<1x1xf32>
    %176 = vector.broadcast %175 : vector<1x1xf32> to vector<1x256xf32>
    %177 = arith.addf %174, %176 : vector<1x256xf32>
    %178 = arith.negf %177 : vector<1x256xf32>
    %179 = math.exp %178 : vector<1x256xf32>
    %cst_80 = arith.constant 1.000000e+00 : f32
    %180 = vector.broadcast %cst_80 : f32 to vector<1x256xf32>
    %181 = arith.addf %180, %179 : vector<1x256xf32>
    %182 = arith.divf %180, %181 : vector<1x256xf32>
    %183 = vector.broadcast %182 : vector<1x256xf32> to vector<4x256xf32>
    %184 = arith.mulf %161, %183 : vector<4x256xf32>
    %185 = arith.addf %184, %1 : vector<4x256xf32>
    %c0_81 = arith.constant 0 : index
    %c0_82 = arith.constant 0 : index
    %c0_83 = arith.constant 0 : index
    %186 = vector.load %arg14[%c0_81, %c0_82, %c0_83] : memref<1x4x256xf32, #tpu.memory_space<vmem>>, vector<1x4x256xf32>
    %187 = vector.shape_cast %186 : vector<1x4x256xf32> to vector<4x256xf32>
    %188 = vector.shape_cast %185 : vector<4x256xf32> to vector<1x4x256xf32>
    tpu.vector_store %arg14[%c0_81, %c0_82, %c0_83], %188 {strides = array<i32>} : memref<1x4x256xf32, #tpu.memory_space<vmem>>, vector<1x4x256xf32>,
    return
  }
  func.func @transform_0(%arg0: i32) -> (i32, i32, i32) {
    %c0_i32 = arith.constant 0 : i32
    %c0_i32_0 = arith.constant 0 : i32
    %c0_i32_1 = arith.constant 0 : i32
    return %arg0, %c0_i32, %c0_i32_0 : i32, i32, i32
  }
  func.func @transform_1(%arg0: i32) -> (i32, i32) {
    %c0_i32 = arith.constant 0 : i32
    %c0_i32_0 = arith.constant 0 : i32
    %c0_i32_1 = arith.constant 0 : i32
    return %c0_i32, %c0_i32_0 : i32, i32
  }
  func.func @transform_2(%arg0: i32) -> (i32, i32) {
    %c0_i32 = arith.constant 0 : i32
    %c0_i32_0 = arith.constant 0 : i32
    %c0_i32_1 = arith.constant 0 : i32
    return %c0_i32, %c0_i32_0 : i32, i32
  }
  func.func @transform_3(%arg0: i32) -> (i32, i32) {
    %c0_i32 = arith.constant 0 : i32
    %c0_i32_0 = arith.constant 0 : i32
    %c0_i32_1 = arith.constant 0 : i32
    return %c0_i32, %c0_i32_0 : i32, i32
  }
  func.func @transform_4(%arg0: i32) -> (i32, i32) {
    %c0_i32 = arith.constant 0 : i32
    %c0_i32_0 = arith.constant 0 : i32
    %c0_i32_1 = arith.constant 0 : i32
    return %c0_i32, %c0_i32_0 : i32, i32
  }
  func.func @transform_5(%arg0: i32) -> (i32, i32) {
    %c0_i32 = arith.constant 0 : i32
    %c0_i32_0 = arith.constant 0 : i32
    %c0_i32_1 = arith.constant 0 : i32
    return %c0_i32, %c0_i32_0 : i32, i32
  }
  func.func @transform_6(%arg0: i32) -> (i32, i32) {
    %c0_i32 = arith.constant 0 : i32
    %c0_i32_0 = arith.constant 0 : i32
    %c0_i32_1 = arith.constant 0 : i32
    return %c0_i32, %c0_i32_0 : i32, i32
  }
  func.func @transform_7(%arg0: i32) -> (i32, i32) {
    %c0_i32 = arith.constant 0 : i32
    %c0_i32_0 = arith.constant 0 : i32
    %c0_i32_1 = arith.constant 0 : i32
    return %c0_i32, %c0_i32_0 : i32, i32
  }
  func.func @transform_8(%arg0: i32) -> (i32, i32) {
    %c0_i32 = arith.constant 0 : i32
    %c0_i32_0 = arith.constant 0 : i32
    %c0_i32_1 = arith.constant 0 : i32
    return %c0_i32, %c0_i32_0 : i32, i32
  }
  func.func @transform_9(%arg0: i32) -> (i32, i32) {
    %c0_i32 = arith.constant 0 : i32
    %c0_i32_0 = arith.constant 0 : i32
    %c0_i32_1 = arith.constant 0 : i32
    return %c0_i32, %c0_i32_0 : i32, i32
  }
  func.func @transform_10(%arg0: i32) -> (i32, i32) {
    %c0_i32 = arith.constant 0 : i32
    %c0_i32_0 = arith.constant 0 : i32
    %c0_i32_1 = arith.constant 0 : i32
    return %c0_i32, %c0_i32_0 : i32, i32
  }
  func.func @transform_11(%arg0: i32) -> (i32, i32) {
    %c0_i32 = arith.constant 0 : i32
    %c0_i32_0 = arith.constant 0 : i32
    %c0_i32_1 = arith.constant 0 : i32
    return %c0_i32, %c0_i32_0 : i32, i32
  }
  func.func @transform_12(%arg0: i32) -> (i32, i32) {
    %c0_i32 = arith.constant 0 : i32
    %c0_i32_0 = arith.constant 0 : i32
    %c0_i32_1 = arith.constant 0 : i32
    return %c0_i32, %c0_i32_0 : i32, i32
  }
  func.func @transform_13(%arg0: i32) -> (i32, i32, i32) {
    %c0_i32 = arith.constant 0 : i32
    %c0_i32_0 = arith.constant 0 : i32
    %c0_i32_1 = arith.constant 0 : i32
    return %arg0, %c0_i32, %c0_i32_0 : i32, i32, i32
  }
}

</mosaic_0001>

<bundles_post_ra>
// kernel: tpu_custom_call.1
= control target key start
LH: loop header
LB: loop body
LE: loop exit
PB: predicated region body
PF: predicated region fallthrough
CT: control target
= control target key end

     0   :  { %s2274_s0 = inlined_call_operand.vmem [shape: f32[2,4,256], index: 0, kind: input, shape index: {}]   ;;  %s2275_s1 = inlined_call_operand.vmem [shape: bf16[4,48], index: 1, kind: input, shape index: {}]   ;;  %s2276_s2 = inlined_call_operand.vmem [shape: f32[4,1], index: 2, kind: input, shape index: {}]   ;;  %s2277_s3 = inlined_call_operand.vmem [shape: bf16[4,48], index: 3, kind: input, shape index: {}]   ;;  %s2278_s4 = inlined_call_operand.vmem [shape: f32[4,1], index: 4, kind: input, shape index: {}]   ;;  %s2279_s5 = inlined_call_operand.vmem [shape: f32[32,4], index: 5, kind: input, shape index: {}]   ;;  %s2280_s6 = inlined_call_operand.vmem [shape: f32[32,1], index: 6, kind: input, shape index: {}]   ;;  %s2281_s7 = inlined_call_operand.vmem [shape: f32[4,32], index: 7, kind: input, shape index: {}]   ;;  %s2282_s8 = inlined_call_operand.vmem [shape: f32[4,1], index: 8, kind: input, shape index: {}]   ;;  %s2283_s9 = inlined_call_operand.vmem [shape: bf16[32,4], index: 9, kind: input, shape index: {}]   ;;  %s2284_s10 = inlined_call_operand.vmem [shape: f32[32,1], index: 10, kind: input, shape index: {}]   ;;  %s2285_s11 = inlined_call_operand.vmem [shape: f32[32,1], index: 11, kind: input, shape index: {}]   ;;  %s2286_s12 = inlined_call_operand.<no memory space> [shape: f32[1,1], index: 12, kind: input, shape index: {}]   ;;  %s2287_s13 = inlined_call_operand.hbm [shape: f32[2,4,256], index: 13, kind: output, shape index: {}]  }
   0x1   :  { %2290 = sst [smem:[#allocation7_spill]] %s2274_s0  ;;  %v18_v0 = vstv %s2286_s12 }
   0x2   :  { %2291 = sst [smem:[#allocation8_spill]] %s2275_s1  ;;  %19 = vst [vmem:[#allocation3] sm:$0x1] %v18_v0 }
   0x3   :  { %2292 = sst [smem:[#allocation9_spill]] %s2276_s2 }
   0x4   :  { %20 = vsyncpa [#allocation5], 0 }
   0x5   :  { %22 = vsyncpa [#allocation5 + $0x1], 0  ;;  %s1800_s27 = smov 0   ;;  %s1802_s28 = smov 0  }
   0x6   :  { %s1804_s29 = smov 0   ;;  %s1806_s30 = smov 0  }
   0x7 LB: > { %s1821_s12 = sadd.s32 4294967295, %s1712_s30   ;;  %s1467_s14 = sadd.s32 4294967294, %s1712_s30   ;;  %s1712_s30 = sphi %s1806_s30, %s2312_s30   ;;  %s1708_s29 = sphi %s1804_s29, %s2311_s29   ;;  %s1704_s28 = sphi %s1802_s28, %s2310_s28   ;;  %s1700_s27 = sphi %s1800_s27, %s2309_s27  }
   0x8   : > { %s1825_s15 = sadd.s32 1, %s1712_s30   ;;  %s313_s16 = sadd.s32 1, %s1708_s29 }
   0x9   : > { %s310_s17 = ssub.s32 %s1712_s30, %s1825_s15  ;;  %p323_p0 = scmp.ne.s32.totalorder %s1708_s29, %s1704_s28 }
   0xa   : > { %p311_p1 = scmp.eq.s32.totalorder %s310_s17, 0  ;;  %p324_p2 = scmp.eq.s32.totalorder %s1821_s12, 1 }
   0xb   : > { %p329_p3 = scmp.ne.s32.totalorder %s1704_s28, %s1700_s27  ;;  %p330_p4 = scmp.eq.s32.totalorder %s1467_s14, 1 }
   0xc   : > { %s1836_s18 = scalar_select %p311_p1, %s1708_s29, %s313_s16  }
   0xd   : > { %p1838_p5 = por %p324_p2, %p323_p0  ;;  %p1842_p6 = por %p330_p4, %p329_p3 }
   0xe   : > { %p1470_p7 = scmp.ge.s32.totalorder %s1712_s30, 1  ;;  %p392_p8 = scmp.lt.s32.totalorder %s1712_s30, 3 }
  0x10   : > { %p393_p9 = pnand %p1470_p7, %p392_p8 }
  0x11   : > { %p436_p10 = scmp.lt.s32.totalorder (!%p393_p9), %s1821_s12, 1  ;;  %s2295_s0 = sld [smem:[#allocation7_spill]] (!%p393_p9) }
  0x12   : > { %396 = sbr.rel (%p393_p9) target bundleno = 1726 (0x6be), region = 72  ;;  %s1714_s26 = smov (!%p393_p9), 127  }
  0x13   : > { %s1715_s14 = smov (!%p393_p9), 111   ;;  %s1716_s16 = smov (!%p393_p9), 112  }
  0x14   : > { %s1717_s17 = smov (!%p393_p9), 113   ;;  %s1721_s23 = smov (!%p393_p9), 17  }
  0x15   : > { %s1722_s24 = smov (!%p393_p9), 15   ;;  %s2296_s2 = sld [smem:[#allocation9_spill]] (!%p393_p9) }
  0x16   : > { %s2307_s1 = sld [smem:[#allocation8_spill]] (!%p393_p9) }
  0x17   : > { %s437_s21 = scalar_select %p436_p10, %s1821_s12, 1  ;;  %v1720_v3 = vmov 0   ;;  %v443_v5 = vlaneseq  ;;  %vm518_vm6 = vcmask 1043456   ;;  %v1723_v18 = vmov 0.0  }
  0x18   : > { %753 = vmatprep.mubr.bf16.mxu0 %v1720_v3  ;;  %1635 = vset.pattern.permute.xlu0 %v1720_v3  ;;  %v1724_v57 = vmov 0.0|0.0  }
  0x19   : > { %s1533_s22 = sshll.u32 %s437_s21, 3  ;;  %s1718_s21 = smov 16   ;;  %978 = vmatprep.mubr.bf16.mxu1 %v1720_v3  ;;  %1636 = vset.pattern.permute.xlu1 %v1720_v3  ;;  %v1899_v6 = vand.u32 127, %v443_v5 }
  0x1a   : > { %s440_s25 = scalar_lea.vmem %s2295_s0, %s1533_s22  ;;  %s2288_s22 = smov 1  }
  0x1b   : > { %v1853_v1 = vld [vmem:[%s440_s25] sm:$0xff]  ;;  %v445_v7 = vadd.s32 128, %v1899_v6  ;;  %v450_v9 = vand.u32 15, %v1899_v6  ;;  %vm598_vm2 = vcmp.lt.s32.totalorder %v1899_v6, 127  ;;  %vm612_vm8 = vcmp.lt.s32.totalorder %v1899_v6, 112 }
  0x1c   : > { %594 = vrot.lane.b32.xlu1 %v1853_v1, %s1714_s26  ;;  %649 = vrot.lane.b32.xlu0 %v1853_v1, %s1715_s14  ;;  %v1861_v2 = vcombine.high %v1853_v1, %v1853_v1  ;;  %v681_v4 = vld [vmem:[%s2296_s2] sm:$0xf]  ;;  %vm653_vm9 = vcmp.lt.s32.totalorder %v1899_v6, 111  ;;  %vm605_vm10 = vcmp.lt.s32.totalorder %v1899_v6, 113  ;;  %vm470_vm12 = vcmp.ge.s32.totalorder %v1899_v6, 16 }
  0x1d   : > { %v457_v8 = vand.u32 15, %v445_v7  ;;  %vm501_vm1 = vcmp.lt.s32.totalorder %v445_v7, 240  ;;  %vm1915_vm5 = vcmp.lt.s32.totalorder %v450_v9, 15  ;;  %vm1936_vm11 = vcmp.ge.s32.totalorder %v450_v9, 1 }
  0x1e   : > { %v1481_v20 = vsel %vm1915_vm5, 1.0, %v1723_v18  ;;  %v1485_v24 = vsel %vm501_vm1, 1.0, %v1723_v18  ;;  %v1479_v38 = vsel %vm1936_vm11, 1.0, %v1723_v18  ;;  %vm2000_vm13 = vmand %vm470_vm12, %vm1915_vm5  ;;  %vm543_vm14 = vcmp.lt.s32.totalorder %v1899_v6, 16 }
  0x1f   : > { %vm1903_vm0 = vcmp.lt.s32.totalorder %v457_v8, 15  ;;  %vm1911_vm4 = vcmp.ge.s32.totalorder %v457_v8, 1  ;;  %v1934_v22 = vsel %vm518_vm6, %v1481_v20, 0.0  ;;  %v1976_v48 = vsel %vm518_vm6, %v1479_v38, 1.0  ;;  %vm474_vm15 = vmand %vm470_vm12, %vm1936_vm11 }
  0x20   : > { %608 = vrot.lane.b32.xlu0 %v1853_v1, %s1716_s16  ;;  %596 = vrot.lane.b32.xlu1 %v1861_v2, %s1714_s26  ;;  %vm513_vm3 = vmand %vm501_vm1, %vm1903_vm0  ;;  %v1949_v30 = vsel %vm1903_vm0, 1.0, %v1723_v18  ;;  %v1985_v53 = vsel %vm518_vm6, 1.0, %v1481_v20  ;;  %vm557_vm0 = vcmp.lt.s32.totalorder %v1899_v6, 1  ;;  %v1477_v20 = vsel %vm2000_vm13, 1.0, %v1723_v18 }
  0x21   : > { %v1487_v19 = vsel %vm513_vm3, 1.0, %v1723_v18  ;;  %vm503_vm7 = vmand %vm501_vm1, %vm1911_vm4  ;;  %v1968_v41 = vsel %vm518_vm6, 1.0, %v1949_v30  ;;  %vm536_vm1 = vcmp.lt.s32.totalorder %v1899_v6, 17  ;;  %vm550_vm3 = vcmp.lt.s32.totalorder %v1899_v6, 15  ;;  %v900_v6 = vld [vmem:[%s2277_s3] sm:$0x3] }
  0x22   : > { %v1943_v27 = vsel %vm518_vm6, %v1487_v19, 0.0  ;;  %v1484_v29 = vsel %vm503_vm7, 1.0, %v1723_v18  ;;  %vm1725_vm5 = vmmov 0   ;;  %vm1242_vm7 = vcmask 1041408  }
  0x23   : > { %v1973_v46 = vsel %vm518_vm6, %v1484_v29, %v1485_v24 }
  0x24   : > { %610 = vrot.lane.b32.xlu1 %v1861_v2, %s1716_s16  ;;  %651 = vrot.lane.b32.xlu0 %v1861_v2, %s1715_s14 }
  0x28   : > { %603 = vrot.lane.b32.xlu1 %v1861_v2, %s1717_s17  ;;  %601 = vrot.lane.b32.xlu0 %v1853_v1, %s1717_s17 }
  0x2c   : > { %541 = vrot.lane.b32.xlu1 %v1861_v2, %s1718_s21  ;;  %539 = vrot.lane.b32.xlu0 %v1853_v1, %s1718_s21 }
  0x30   : > { %555 = vrot.lane.b32.xlu1 %v1861_v2, %s2288_s22  ;;  %553 = vrot.lane.b32.xlu0 %v1853_v1, %s2288_s22  ;;  %s2308_s22 = smov 1  }
  0x34   : > { %534 = vrot.lane.b32.xlu1 %v1861_v2, %s1721_s23  ;;  %532 = vrot.lane.b32.xlu0 %v1853_v1, %s1721_s23 }
  0x38   : > { %548 = vrot.lane.b32.xlu1 %v1861_v2, %s1722_s24  ;;  %546 = vrot.lane.b32.xlu0 %v1853_v1, %s1722_s24 }
  0x3c   : > { %684 = vperm.xlu0 %1635, %v681_v4  }
  0x8e   : > { %v595_v11 = vpop.permute.xlu1 %594  ;;  %v650_v12 = vpop.permute.xlu0 %649 }
  0x92   : > { %v609_v15 = vpop.permute.xlu0 %608  ;;  %v597_v16 = vpop.permute.xlu1 %596 }
  0x93   : > { %v600_v17 = vsel %vm598_vm2, %v597_v16, %v595_v11  ;;  %v599_v21 = vsel %vm598_vm2, %v595_v11, %v597_v16  ;;  %v1475_v16 = vsel %vm1911_vm4, 1.0, %v1723_v18  ;;  %vm717_vm4 = vcmask 392192  }
  0x94   : > { %v618_v25 = vrot.slane %v600_v17, 4  ;;  %v617_v35 = vrot.slane %v599_v21, 4  ;;  %v1476_v17 = vsel %vm470_vm12, 1.0, %v1723_v18  ;;  %v2038_v29 = vsel %vm518_vm6, %v1475_v16, 1.0 }
  0x96   : > { %v611_v26 = vpop.permute.xlu1 %610  ;;  %v652_v28 = vpop.permute.xlu0 %651  ;;  %v628_v42 = vsel %vm518_vm6, %v1861_v2, %v618_v25  ;;  %v627_v52 = vsel %vm518_vm6, %v1853_v1, %v617_v35 }
  0x97   : > { %v613_v31 = vsel %vm612_vm8, %v609_v15, %v611_v26  ;;  %v614_v32 = vsel %vm612_vm8, %v611_v26, %v609_v15  ;;  %v654_v33 = vsel %vm653_vm9, %v650_v12, %v652_v28  ;;  %v655_v34 = vsel %vm653_vm9, %v652_v28, %v650_v12 }
  0x98   : > { %v656_v36 = vsel %vm518_vm6, %v654_v33, 0.0  ;;  %v657_v37 = vsel %vm518_vm6, %v655_v34, 0.0  ;;  %v623_v43 = vrot.slane %v613_v31, 4  ;;  %v624_v44 = vrot.slane %v614_v32, 4 }
  0x99   : > { %v658_v39 = vmul.f32 %v656_v36, %v1934_v22  ;;  %v659_v40 = vmul.f32 %v657_v37, %v1943_v27  ;;  %v632_v60 = vmul.f32 %v628_v42, %v1968_v41  ;;  %v631_v4 = vmul.f32 %v627_v52, %v1985_v53 }
  0x9a   : > { %v604_v45 = vpop.permute.xlu1 %603  ;;  %v602_v47 = vpop.permute.xlu0 %601  ;;  %v1474_v15 = vsel %vm474_vm15, 1.0, %v1723_v18  ;;  %v2041_v31 = vsel %vm518_vm6, %v1477_v20, %v1479_v38  ;;  %v2045_v32 = vsel %vm518_vm6, %v1949_v30, %v1475_v16 }
  0x9b   : > { %v606_v49 = vsel %vm605_vm10, %v602_v47, %v604_v45  ;;  %v607_v50 = vsel %vm605_vm10, %v604_v45, %v602_v47  ;;  %v1538_v51 = vpack.c.bf16 %v659_v40, %v658_v39  ;;  %v2035_v28 = vsel %vm518_vm6, %v1474_v15, %v1476_v17 }
  0x9c   : > { %v629_v54 = vsel %vm518_vm6, %v606_v49, %v623_v43  ;;  %v630_v55 = vsel %vm518_vm6, %v607_v50, %v624_v44 }
  0x9d   : > { %v634_v56 = vmul.f32 %v630_v55, %v1973_v46  ;;  %v1499_v58 = vcombine.high %v1538_v51, %v1724_v57  ;;  %v1498_v59 = vcombine.low %v1538_v51, %v1724_v57  ;;  %v633_v61 = vmul.f32 %v629_v54, %v1976_v48  ;;  %v674_v51 = vld [vmem:[%s2307_s1] sm:$0x3] }
  0x9e   : > { %v542_v62 = vpop.permute.xlu1 %541  ;;  %v540_v63 = vpop.permute.xlu0 %539 }
  0x9f   : > { %731 = vmatprep.subr.bf16.mxu0 %v1499_v58  ;;  %v1550_v0 = vpack.c.bf16 %v634_v56, %v632_v60  ;;  %v1549_v10 = vpack.c.bf16 %v633_v61, %v631_v4  ;;  %v544_v11 = vsel %vm543_vm14, %v540_v63, %v542_v62  ;;  %v545_v12 = vsel %vm543_vm14, %v542_v62, %v540_v63  ;;  %v907_v4 = vld [vmem:[%s2278_s4] sm:$0xf] }
  0xa0   : > { %732 = vmatpush1.bf16.msra.mxu0 %v1498_v59  ;;  %v562_v25 = vrot.slane %v545_v12, 4  ;;  %v563_v26 = vrot.slane %v544_v11, 4 }
  0xa1   : > { %733 = vmatprep.subr.bf16.mxu0 %v1550_v0 }
  0xa2   : > { %v556_v8 = vpop.permute.xlu1 %555  ;;  %v554_v9 = vpop.permute.xlu0 %553 }
  0xa3   : > { %v558_v21 = vsel %vm557_vm0, %v554_v9, %v556_v8  ;;  %v559_v23 = vsel %vm557_vm0, %v556_v8, %v554_v9 }
  0xa4   : > { %734 = vmatpush1.bf16.msra.mxu0 %v1549_v10  ;;  %v568_v33 = vrot.slane %v559_v23, 4  ;;  %v569_v34 = vrot.slane %v558_v21, 4 }
  0xa6   : > { %v535_v14 = vpop.permute.xlu1 %534  ;;  %v533_v19 = vpop.permute.xlu0 %532 }
  0xa7   : > { %v537_v24 = vsel %vm536_vm1, %v533_v19, %v535_v14  ;;  %v538_v13 = vsel %vm536_vm1, %v535_v14, %v533_v19 }
  0xa8   : > { %v572_v35 = vsel %vm518_vm6, %v538_v13, %v562_v25  ;;  %v573_v36 = vsel %vm518_vm6, %v537_v24, %v563_v26 }
  0xa9   : > { %v576_v30 = vmul.f32 %v572_v35, %v2035_v28  ;;  %v577_v44 = vmul.f32 %v573_v36, %v2038_v29 }
  0xaa   : > { %v549_v37 = vpop.permute.xlu1 %548  ;;  %v547_v39 = vpop.permute.xlu0 %546 }
  0xab   : > { %v551_v40 = vsel %vm550_vm3, %v547_v39, %v549_v37  ;;  %v552_v42 = vsel %vm550_vm3, %v549_v37, %v547_v39 }
  0xac   : > { %v574_v38 = vsel %vm518_vm6, %v552_v42, %v568_v33  ;;  %v575_v43 = vsel %vm518_vm6, %v551_v40, %v569_v34 }
  0xad   : > { %v578_v45 = vmul.f32 %v574_v38, %v2041_v31  ;;  %v579_v47 = vmul.f32 %v575_v43, %v2045_v32 }
  0xaf   : > { %v1548_v49 = vpack.c.bf16 %v579_v47, %v577_v44  ;;  %v1547_v50 = vpack.c.bf16 %v578_v45, %v576_v30 }
  0xb1   : > { %735 = vmatprep.subr.bf16.mxu0 %v1548_v49 }
  0xb2   : > { %736 = vmatpush1.bf16.msra.mxu0 %v1547_v50 }
  0xb5   : > { %1500 = vmatmul.mubr.msk.bf16.vlgmr.msra.gmra.mxu0 %vm717_vm4, %v674_v51 }
  0xb7   : > { %v685_v52 = vpop.permute.xlu0 %684 }
 0x175   : > { %v755_v54 = vpop.f32.mrf.mxu0 }
 0x176   : > { %v756_v55 = vadd.f32 %v755_v54, %v685_v52 }
 0x177   : > { %v757_v56 = vpop.f32.mrf.mxu0 }
 0x178   : > { %v762_v58 = vmax.f32 %v756_v55, 0.0  ;;  %v758_v59 = vadd.f32 %v757_v56, %v685_v52 }
 0x179   : > { %v759_v60 = vpop.f32.mrf.mxu0 }
 0x17a   : > { %v764_v61 = vadd.f32 %v762_v58, %v1853_v1  ;;  %v763_v62 = vmax.f32 %v758_v59, 0.0 }
 0x17b   : > { %v760_v63 = vpop.f32.mrf.mxu0 }
 0x17c   : > { %824 = vrot.lane.b32.xlu0 %v764_v61, %s1714_s26  ;;  %876 = vrot.lane.b32.xlu1 %v764_v61, %s1715_s14  ;;  %v765_v0 = vadd.f32 %v763_v62, %v1861_v2 }
 0x180   : > { %836 = vrot.lane.b32.xlu0 %v764_v61, %s1716_s16  ;;  %878 = vrot.lane.b32.xlu1 %v765_v0, %s1715_s14 }
 0x184   : > { %830 = vrot.lane.b32.xlu0 %v764_v61, %s1717_s17  ;;  %826 = vrot.lane.b32.xlu1 %v765_v0, %s1714_s26 }
 0x188   : > { %772 = vrot.lane.b32.xlu0 %v764_v61, %s1718_s21  ;;  %838 = vrot.lane.b32.xlu1 %v765_v0, %s1716_s16 }
 0x18c   : > { %784 = vrot.lane.b32.xlu0 %v764_v61, %s2308_s22  ;;  %832 = vrot.lane.b32.xlu1 %v765_v0, %s1717_s17 }
 0x190   : > { %766 = vrot.lane.b32.xlu0 %v764_v61, %s1721_s23  ;;  %774 = vrot.lane.b32.xlu1 %v765_v0, %s1718_s21 }
 0x194   : > { %778 = vrot.lane.b32.xlu0 %v764_v61, %s1722_s24  ;;  %786 = vrot.lane.b32.xlu1 %v765_v0, %s2308_s22  ;;  %s1546_s22 = sshll.u32 %s1821_s12, 7  ;;  %s1726_s12 = smov [#allocation4]  }
 0x195   : > { %s1406_s16 = scalar_lea.hbm %s2287_s13, %s1546_s22 }
 0x198   : > { %910 = vperm.xlu0 %1635, %v907_v4   ;;  %768 = vrot.lane.b32.xlu1 %v765_v0, %s1721_s23  ;;  %s433_s23 = sand.u32 1, %s1704_s28  }
 0x199   : > { %s1394_s17 = scalar_lea.sflag [#allocation5], %s433_s23 }
 0x19c   : > { %780 = vrot.lane.b32.xlu1 %v765_v0, %s1722_s24  ;;  %s1471_s24 = sshll.u32 %s433_s23, 3 }
 0x19d   : > { %s435_s14 = scalar_lea.vmem [#allocation4], %s1471_s24  ;;  %s1656_s24 = sshll.u32 %s1726_s12, 4  ;;  %s1657_s24 = int_to_ptr.vmem [resolvable:$false] %s1656_s24 }
 0x19e   : > { %s1408_s25 = sshll.u32 %s435_s14, 4  ;;  %s1658_s1 = scalar_lea.vmem %s1657_s24, 256  ;;  %s1409_s25 = int_to_ptr.vmem [resolvable:$true] %s1408_s25 }
 0x19f   : > { %s1652_s21 = scalar_lea.vmem %s1409_s25, 128  ;;  %p1659_p0 = scmp.lt.s32.totalorder %s1409_s25, %s1657_s24 }
 0x1a0   : > { %p1653_p11 = scmp.ne.s32.totalorder %s1409_s25, %s1652_s21  ;;  %p1660_p1 = scmp.lt.s32.totalorder %s1658_s1, %s1652_s21 }
 0x1a2   : > { %p1654_p12 = pnand %p1653_p11, %p1838_p5  ;;  %p1661_p2 = por %p1660_p1, %p1659_p0 }
 0x1a4   : > { %p1655_p13 = pneg %p1654_p12 }
 0x1a6   : > { %p1662_p3 = pnand %p1661_p2, %p1655_p13 }
 0x1ee   : > { %v825_v7 = vpop.permute.xlu0 %824  ;;  %v877_v8 = vpop.permute.xlu1 %876 }
 0x1f2   : > { %v837_v9 = vpop.permute.xlu0 %836  ;;  %v879_v10 = vpop.permute.xlu1 %878 }
 0x1f3   : > { %v880_v11 = vsel %vm653_vm9, %v877_v8, %v879_v10  ;;  %v881_v12 = vsel %vm653_vm9, %v879_v10, %v877_v8 }
 0x1f4   : > { %v882_v14 = vsel %vm518_vm6, %v880_v11, 0.0  ;;  %v883_v15 = vsel %vm518_vm6, %v881_v12, 0.0 }
 0x1f5   : > { %v884_v16 = vmul.f32 %v882_v14, %v1934_v22  ;;  %v885_v17 = vmul.f32 %v883_v15, %v1943_v27 }
 0x1f6   : > { %v831_v19 = vpop.permute.xlu0 %830  ;;  %v827_v20 = vpop.permute.xlu1 %826 }
 0x1f7   : > { %v828_v21 = vsel %vm598_vm2, %v825_v7, %v827_v20  ;;  %v829_v23 = vsel %vm598_vm2, %v827_v20, %v825_v7  ;;  %v1544_v24 = vpack.c.bf16 %v885_v17, %v884_v16  ;;  %vm1002_vm2 = vcmask 31744  }
 0x1f8   : > { %v844_v26 = vrot.slane %v828_v21, 4  ;;  %v845_v33 = vrot.slane %v829_v23, 4 }
 0x1f9   : > { %v1512_v13 = vcombine.high %v1544_v24, %v1724_v57  ;;  %v1511_v25 = vcombine.low %v1544_v24, %v1724_v57 }
 0x1fa   : > { %v839_v34 = vpop.permute.xlu1 %838  ;;  %v773_v35 = vpop.permute.xlu0 %772  ;;  %v854_v36 = vsel %vm518_vm6, %v764_v61, %v844_v26  ;;  %v855_v37 = vsel %vm518_vm6, %v765_v0, %v845_v33 }
 0x1fb   : > { %v840_v22 = vsel %vm612_vm8, %v837_v9, %v839_v34  ;;  %v841_v27 = vsel %vm612_vm8, %v839_v34, %v837_v9  ;;  %956 = vmatprep.subr.bf16.mxu1 %v1512_v13  ;;  %v859_v47 = vmul.f32 %v855_v37, %v1968_v41  ;;  %v858_v49 = vmul.f32 %v854_v36, %v1985_v53  ;;  %v994_v34 = vld [vmem:[%s2279_s5] sm:$0xff]  ;;  %v996_v36 = vld [vmem:[%s2279_s5 + $0x10] sm:$0xff]  ;;  %v997_v37 = vld [vmem:[%s2279_s5 + $0x18] sm:$0xff] }
 0x1fc   : > { %957 = vmatpush1.bf16.msra.mxu1 %v1511_v25  ;;  %v850_v39 = vrot.slane %v840_v22, 4  ;;  %v851_v40 = vrot.slane %v841_v27, 4  ;;  %1567 = vmatprep.mubr.msk.f32.mxu0 %vm1002_vm2, %v994_v34 }
 0x1fe   : > { %v833_v42 = vpop.permute.xlu1 %832  ;;  %v785_v50 = vpop.permute.xlu0 %784 }
 0x1ff   : > { %v834_v57 = vsel %vm605_vm10, %v831_v19, %v833_v42  ;;  %v835_v38 = vsel %vm605_vm10, %v833_v42, %v831_v19  ;;  %v1001_v42 = vld [vmem:[%s2280_s6 + $0x18] sm:$0xff] }
 0x200   : > { %v856_v43 = vsel %vm518_vm6, %v834_v57, %v850_v39  ;;  %v857_v30 = vsel %vm518_vm6, %v835_v38, %v851_v40  ;;  %v999_v57 = vld [vmem:[%s2280_s6 + $0x8] sm:$0xff] }
 0x201   : > { %v860_v44 = vmul.f32 %v856_v43, %v1976_v48  ;;  %v861_v45 = vmul.f32 %v857_v30, %v1973_v46  ;;  %v1000_v43 = vld [vmem:[%s2280_s6 + $0x10] sm:$0xff] }
 0x202   : > { %v775_v51 = vpop.permute.xlu1 %774  ;;  %v767_v56 = vpop.permute.xlu0 %766 }
 0x203   : > { %v1554_v52 = vpack.c.bf16 %v861_v45, %v859_v47  ;;  %v1553_v54 = vpack.c.bf16 %v860_v44, %v858_v49  ;;  %v776_v58 = vsel %vm543_vm14, %v773_v35, %v775_v51  ;;  %v777_v48 = vsel %vm543_vm14, %v775_v51, %v773_v35  ;;  %v995_v35 = vld [vmem:[%s2279_s5 + $0x8] sm:$0xff]  ;;  %v998_v44 = vld [vmem:[%s2280_s6] sm:$0xff] }
 0x204   : > { %v792_v61 = vrot.slane %v777_v48, 4  ;;  %v793_v62 = vrot.slane %v776_v58, 4  ;;  %v1108_v58 = vld [vmem:[%s2282_s8] sm:$0xf] }
 0x205   : > { %958 = vmatprep.subr.bf16.mxu1 %v1554_v52 }
 0x206   : > { %959 = vmatpush1.bf16.msra.mxu1 %v1553_v54  ;;  %v787_v55 = vpop.permute.xlu1 %786  ;;  %v779_v63 = vpop.permute.xlu0 %778 }
 0x207   : > { %v788_v41 = vsel %vm557_vm0, %v785_v50, %v787_v55  ;;  %v789_v46 = vsel %vm557_vm0, %v787_v55, %v785_v50 }
 0x208   : > { %v798_v0 = vrot.slane %v789_v46, 4  ;;  %v799_v4 = vrot.slane %v788_v41, 4 }
 0x20a   : > { %v769_v59 = vpop.permute.xlu1 %768 }
 0x20b   : > { %v770_v53 = vsel %vm536_vm1, %v767_v56, %v769_v59  ;;  %v771_v60 = vsel %vm536_vm1, %v769_v59, %v767_v56  ;;  %v1107_v56 = vld [vmem:[%s2281_s7] sm:$0xf] }
 0x20c   : > { %v802_v7 = vsel %vm518_vm6, %v771_v60, %v792_v61  ;;  %v803_v8 = vsel %vm518_vm6, %v770_v53, %v793_v62  ;;  %v1203_v62 = vld [vmem:[%s2284_s10 + $0x8] sm:$0xff] }
 0x20d   : > { %v806_v15 = vmul.f32 %v802_v7, %v2035_v28  ;;  %v807_v16 = vmul.f32 %v803_v8, %v2038_v29  ;;  %v1311_v7 = vld [vmem:[%s2285_s11 + $0x8] sm:$0xff]  ;;  %v1312_v8 = vld [vmem:[%s2285_s11 + $0x10] sm:$0xff] }
 0x20e   : > { %v781_v9 = vpop.permute.xlu1 %780 }
 0x20f   : > { %v782_v10 = vsel %vm550_vm3, %v779_v63, %v781_v9  ;;  %v783_v11 = vsel %vm550_vm3, %v781_v9, %v779_v63  ;;  %v1204_v63 = vld [vmem:[%s2284_s10 + $0x10] sm:$0xff]  ;;  %v1360_v9 = vld [vmem:[#allocation3] sm:$0x1] }
 0x210   : > { %v804_v12 = vsel %vm518_vm6, %v783_v11, %v798_v0  ;;  %v805_v14 = vsel %vm518_vm6, %v782_v10, %v799_v4  ;;  %v1205_v0 = vld [vmem:[%s2284_s10 + $0x18] sm:$0xff]  ;;  %v1310_v4 = vld [vmem:[%s2285_s11] sm:$0xff] }
 0x211   : > { %v808_v17 = vmul.f32 %v804_v12, %v2041_v31  ;;  %v809_v19 = vmul.f32 %v805_v14, %v2045_v32  ;;  %v1313_v10 = vld [vmem:[%s2285_s11 + $0x18] sm:$0xff] }
 0x213   : > { %v1552_v20 = vpack.c.bf16 %v809_v19, %v807_v16  ;;  %v1551_v21 = vpack.c.bf16 %v808_v17, %v806_v15  ;;  %v911_v23 = vpop.permute.xlu0 %910  ;;  %v1638_v19 = vld [vmem:[%s2283_s9] sm:$0xff]  }
 0x215   : > { %960 = vmatprep.subr.bf16.mxu1 %v1552_v20  ;;  %v1639_v20 = vld [vmem:[%s2283_s9 + $0x8] sm:$0xff]  }
 0x216   : > { %961 = vmatpush1.bf16.msra.mxu1 %v1551_v21 }
 0x219   : > { %1513 = vmatmul.mubr.msk.bf16.vlgmr.msra.gmra.mxu1 %vm717_vm4, %v900_v6 }
 0x21a   : > { %1281 = vmatprep.mubr.bf16.mxu1 %v1720_v3 }
 0x2d9   : > { %v980_v28 = vpop.f32.mrf.mxu1 }
 0x2da   : > { %v2143_v24 = vadd.f32 %v980_v28, %v911_v23 }
 0x2db   : > { %v982_v29 = vpop.f32.mrf.mxu1 }
 0x2dc   : > { %v2145_v31 = vadd.f32 %v982_v29, %v911_v23  ;;  %v987_v13 = vsel %vm518_vm6, %v2143_v24, 0.0 }
 0x2dd   : > { %v984_v32 = vpop.f32.mrf.mxu1 }
 0x2de   : > { %v988_v25 = vsel %vm518_vm6, %v2145_v31, 0.0 }
 0x2df   : > { %v985_v26 = vpop.f32.mrf.mxu1  ;;  %v989_v33 = vadd.f32 %v988_v25, %v987_v13 }
 0x2e1   : > { %990 = vadd.xlane.f32.xlu1 %v989_v33 }
 0x2f2   : > { %1363 = vperm.xlu1 %1636, %v1360_v9  }
 0x36a   : > { %v991_v22 = vpop.xlane.xlu1 %990 }
 0x36b   : > { %v993_v27 = vmul.f32 0.00390625, %v991_v22 }
 0x36d   : > { %1565 = vmatprep.subr.msk.mxu0 %vm518_vm6, %v993_v27 }
 0x36e   : > { %1566 = vmatpush3.msk.msra.mxu0 %vm518_vm6, %v993_v27  ;;  %vm1109_vm6 = vcmask 261120  }
 0x36f   : > { %1568 = vmatmul.mubr.msk.f32.vlgmr.msra.gmra.mxu0 %vm1002_vm2, %v995_v35  ;;  %1573 = vmatprep.subr.mxu0 %v1723_v18 }
 0x370   : > { %1570 = vmatprep.mubr.msk.f32.mxu0 %vm1002_vm2, %v996_v36 }
 0x373   : > { %1571 = vmatmul.mubr.msk.f32.gmra.mxu0 %vm1002_vm2, %v997_v37 }
 0x374   : > { %1581 = vmatprep.mubr.msk.f32.mxu0 %vm1725_vm5, %v1723_v18 }
 0x42f   : > { %v1569_v39 = vpop.f32.mrf.mxu0 }
 0x430   : > { %v1090_v47 = vadd.f32 %v1569_v39, %v999_v57 }
 0x431   : > { %v1084_v40 = vpop.f32.mrf.mxu0 }
 0x432   : > { %v1085_v51 = vadd.f32 %v1084_v40, %v998_v44  ;;  %v1104_v54 = vmax.f32 %v1090_v47, 0.0 }
 0x433   : > { %v1572_v38 = vpop.f32.mrf.mxu0 }
 0x434   : > { %v1100_v30 = vadd.f32 %v1572_v38, %v1001_v42  ;;  %v1103_v55 = vmax.f32 %v1085_v51, 0.0 }
 0x435   : > { %v1094_v45 = vpop.f32.mrf.mxu0 }
 0x436   : > { %v1106_v49 = vmax.f32 %v1100_v30, 0.0  ;;  %v1095_v50 = vadd.f32 %v1094_v45, %v1000_v43 }
 0x438   : > { %v1105_v52 = vmax.f32 %v1095_v50, 0.0  ;;  %1574 = vmatpush3.msra.mxu0 %v1106_v49 }
 0x439   : > { %1575 = vmatprep.subr.mxu0 %v1723_v18 }
 0x43a   : > { %1576 = vmatpush3.msra.mxu0 %v1105_v52 }
 0x43b   : > { %1577 = vmatprep.subr.mxu0 %v1723_v18 }
 0x43c   : > { %1578 = vmatpush3.msra.mxu0 %v1104_v54 }
 0x43d   : > { %1579 = vmatprep.subr.mxu0 %v1723_v18  ;;  %v1202_v18 = vld [vmem:[%s2284_s10] sm:$0xff] }
 0x43e   : > { %1580 = vmatpush3.msra.mxu0 %v1103_v55 }
 0x43f   : > { %1582 = vmatmul.mubr.msk.f32.vlgmr.msra.gmra.mxu0 %vm1109_vm6, %v1107_v56 }
 0x4ff   : > { %v1179_v48 = vpop.f32.mrf.mxu0 }
 0x500   : > { %v1180_v59 = vadd.f32 %v1179_v48, %v1108_v58 }
 0x501   : > { %v1583_v41 = vpop.f32.mrf.mxu0 }
 0x502   : > { %v1520_v46 = vmul.f32 -1.442695, %v1180_v59 }
 0x504   : > { %1640 = vpow2.f32 %v1520_v46 }
 0x511   : > { %v1641_v53 = vpop.eup %1640 }
 0x512   : > { %v1186_v60 = vadd.f32 1.0, %v1641_v53 }
 0x514   : > { %1642 = vrcp.f32 %v1186_v60 }
 0x521   : > { %v1643_v61 = vpop.eup %1642 }
 0x522   : > { %1191 = vperm.xlu0 %1635, %v1643_v61  }
 0x526   : > { %1208 = vperm.xlu0 %1635, %v1202_v18  }
 0x52a   : > { %1213 = vperm.xlu0 %1635, %v1203_v62  }
 0x52e   : > { %1218 = vperm.xlu0 %1635, %v1204_v63  }
 0x532   : > { %1223 = vperm.xlu0 %1635, %v1205_v0   ;;  %v1367_v0 = vshrl.u32 %v443_v5, 7 }
 0x536   : > { %1316 = vperm.xlu0 %1635, %v1310_v4  }
 0x53a   : > { %1321 = vperm.xlu0 %1635, %v1311_v7  }
 0x53e   : > { %1326 = vperm.xlu0 %1635, %v1312_v8  }
 0x542   : > { %1331 = vperm.xlu0 %1635, %v1313_v10   ;;  %v1368_v10 = vsub.s32 0, %v1367_v0 }
 0x59d   : > { %v1192_v11 = vpop.permute.xlu0 %1191 }
 0x59e   : > { %v2217_v12 = vmul.f32 %v1192_v11, %v2143_v24  ;;  %v2220_v14 = vmul.f32 %v1192_v11, %v2145_v31  ;;  %v1364_v11 = vpop.permute.xlu1 %1363 }
 0x5a0   : > { %v1200_v15 = vpack.c.bf16 %v2217_v12, %v2217_v12  ;;  %v1201_v16 = vpack.c.bf16 %v2220_v14, %v2220_v14 }
 0x5a1   : > { %v1209_v21 = vpop.permute.xlu0 %1208 }
 0x5a2   : > { %1523 = vmatprep.subr.msk.bf16.mxu1 %vm1242_vm7, %v1201_v16  ;;  %v1244_v17 = vsel %vm1242_vm7, %v1200_v15, 0 }
 0x5a3   : > { %1264 = vmatpush1.bf16.msra.mxu1 %v1244_v17 }
 0x5a5   : > { %v1214_v6 = vpop.permute.xlu0 %1213 }
 0x5a6   : > { %1524 = vmatmul.mubr.msk.bf16.vlgmr.msra.gmra.mxu1 %vm1002_vm2, %v1638_v19 }
 0x5a7   : > { %1291 = vmatprep.mubr.bf16.mxu1 %v1720_v3 }
 0x5a9   : > { %v1219_v23 = vpop.permute.xlu0 %1218 }
 0x5ad   : > { %v1224_v28 = vpop.permute.xlu0 %1223 }
 0x5ae   : > { %1525 = vmatmul.mubr.msk.bf16.gmra.mxu1 %vm1002_vm2, %v1639_v20  ;;  %v1369_v20 = vrot.slane %v1364_v11, %v1368_v10 }
 0x5b1   : > { %v1317_v24 = vpop.permute.xlu0 %1316 }
 0x5b5   : > { %v1322_v32 = vpop.permute.xlu0 %1321 }
 0x5b9   : > { %v1327_v39 = vpop.permute.xlu0 %1326 }
 0x5bd   : > { %v1332_v48 = vpop.permute.xlu0 %1331 }
 0x666   : > { %v1283_v29 = vpop.f32.mrf.mxu1 }
 0x667   : > { %v1284_v13 = vadd.f32 %v1283_v29, %v1209_v21 }
 0x668   : > { %v1285_v31 = vpop.f32.mrf.mxu1 }
 0x669   : > { %v1286_v33 = vadd.f32 %v1285_v31, %v1209_v21  ;;  %v1302_v27 = vmax.f32 %v1284_v13, 0.0 }
 0x66a   : > { %v1287_v25 = vpop.f32.mrf.mxu1 }
 0x66b   : > { %v1288_v26 = vadd.f32 %v1287_v25, %v1214_v6  ;;  %v1303_v40 = vmax.f32 %v1286_v33, 0.0  ;;  %v1334_v30 = vmul.f32 %v1317_v24, %v1302_v27 }
 0x66c   : > { %v1289_v34 = vpop.f32.mrf.mxu1 }
 0x66d   : > { %v1304_v3 = vmax.f32 %v1288_v26, 0.0  ;;  %v1290_v22 = vadd.f32 %v1289_v34, %v1214_v6  ;;  %v1335_v51 = vmul.f32 %v1317_v24, %v1303_v40 }
 0x66e   : > { %v1293_v35 = vpop.f32.mrf.mxu1 }
 0x66f   : > { %v1305_v36 = vmax.f32 %v1290_v22, 0.0  ;;  %v1294_v37 = vadd.f32 %v1293_v35, %v1219_v23  ;;  %v1336_v57 = vmul.f32 %v1322_v32, %v1304_v3 }
 0x670   : > { %v1295_v42 = vpop.f32.mrf.mxu1 }
 0x671   : > { %v1306_v38 = vmax.f32 %v1294_v37, 0.0  ;;  %v1296_v43 = vadd.f32 %v1295_v42, %v1219_v23  ;;  %v1337_v45 = vmul.f32 %v1322_v32, %v1305_v36  ;;  %v1342_v54 = vadd.f32 %v1336_v57, %v1334_v30 }
 0x672   : > { %v1297_v44 = vpop.f32.mrf.mxu1 }
 0x673   : > { %v1338_v47 = vmul.f32 %v1327_v39, %v1306_v38  ;;  %v1307_v49 = vmax.f32 %v1296_v43, 0.0  ;;  %v1298_v50 = vadd.f32 %v1297_v44, %v1224_v28  ;;  %v1351_v59 = vadd.f32 %v1337_v45, %v1335_v51 }
 0x674   : > { %v1299_v52 = vpop.f32.mrf.mxu1 }
 0x675   : > { %v1339_v55 = vmul.f32 %v1327_v39, %v1307_v49  ;;  %v1308_v56 = vmax.f32 %v1298_v50, 0.0  ;;  %v1300_v58 = vadd.f32 %v1299_v52, %v1224_v28  ;;  %v1343_v41 = vadd.f32 %v1342_v54, %v1338_v47 }
 0x677   : > { %v1340_v46 = vmul.f32 %v1332_v48, %v1308_v56  ;;  %v1309_v53 = vmax.f32 %v1300_v58, 0.0  ;;  %v1352_v60 = vadd.f32 %v1351_v59, %v1339_v55 }
 0x679   : > { %v1344_v61 = vadd.f32 %v1343_v41, %v1340_v46  ;;  %v1341_v18 = vmul.f32 %v1332_v48, %v1309_v53 }
 0x67b   : > { %v1345_v62 = vrot.slane %v1344_v61, 4  ;;  %v1353_v63 = vadd.f32 %v1352_v60, %v1341_v18 }
 0x67d   : > { %v1346_v4 = vadd.f32 %v1345_v62, %v1344_v61  ;;  %v1354_v7 = vrot.slane %v1353_v63, 4 }
 0x67f   : > { %v1355_v8 = vadd.f32 %v1354_v7, %v1353_v63  ;;  %v1347_v9 = vrot.slane %v1346_v4, 2 }
 0x681   : > { %v1348_v15 = vadd.f32 %v1347_v9, %v1346_v4  ;;  %v1356_v16 = vrot.slane %v1355_v8, 2 }
 0x683   : > { %v1349_v17 = vrot.slane %v1348_v15, 1  ;;  %v1357_v19 = vadd.f32 %v1356_v16, %v1355_v8 }
 0x685   : > { %v1350_v21 = vadd.f32 %v1349_v17, %v1348_v15  ;;  %v1358_v6 = vrot.slane %v1357_v19, 1 }
 0x687   : > { %v1359_v23 = vadd.f32 %v1358_v6, %v1357_v19  ;;  %v1370_v28 = vadd.f32 %v1369_v20, %v1350_v21 }
 0x689   : > { %v1371_v24 = vadd.f32 %v1369_v20, %v1359_v23  ;;  %v1526_v29 = vmul.f32 -1.442695, %v1370_v28 }
 0x68b   : > { %1644 = vpow2.f32 %v1526_v29  ;;  %v1527_v5 = vmul.f32 -1.442695, %v1371_v24 }
 0x68d   : > { %1646 = vpow2.f32 %v1527_v5 }
 0x698   : > { %v1645_v31 = vpop.eup %1644 }
 0x699   : > { %v1378_v32 = vadd.f32 1.0, %v1645_v31 }
 0x69a   : > { %v1647_v13 = vpop.eup %1646 }
 0x69b   : > { %v1379_v25 = vadd.f32 1.0, %v1647_v13  ;;  %1648 = vrcp.f32 %v1378_v32 }
 0x69d   : > { %1650 = vrcp.f32 %v1379_v25 }
 0x6a8   : > { %v1649_v26 = vpop.eup %1648 }
 0x6a9   : > { %v1384_v33 = vmul.f32 %v1649_v26, %v2217_v12 }
 0x6aa   : > { %v1651_v34 = vpop.eup %1650 }
 0x6ab   : > { %v1385_v3 = vmul.f32 %v1651_v34, %v2220_v14  ;;  %v1386_v22 = vadd.f32 %v1384_v33, %v1853_v1 }
 0x6ad   : > { %v1387_v27 = vadd.f32 %v1385_v3, %v1861_v2 }
 0x6af   : > { %v1390_v35 = vcombine.low %v1386_v22, %v1387_v27 }
 0x6b1   : > { %1392 = vst [vmem:[%s435_s14] sm:$0xff] %v1390_v35 }
 0x6b2   : > { %1665 = shalt.err (!%p1662_p3)
}
 0x6b3   : > { %s1666_s2 = scalar_lea.hbm %s1406_s16, 128  ;;  %s1670_s14 = scalar_lea.hbm %s2287_s13, 256 }
 0x6b4   : > { %p1667_p4 = scmp.ne.s32.totalorder %s1406_s16, %s1666_s2  ;;  %p1671_p9 = scmp.lt.s32.totalorder %s1406_s16, %s2287_s13 }
 0x6b5   : > { %p1672_p10 = scmp.lt.s32.totalorder %s1670_s14, %s1666_s2 }
 0x6b6   : > { %p1668_p7 = pnand %p1667_p4, %p1838_p5 }
 0x6b7   : > { %p1673_p11 = por %p1672_p10, %p1671_p9 }
 0x6b8   : > { %p1669_p8 = pneg %p1668_p7 }
 0x6ba   : > { %p1674_p12 = pnand %p1673_p11, %p1669_p8 }
 0x6bc   : > { %1677 = shalt.err (!%p1674_p12)
}
 0x6bd   : > { %1584 = dma.vmem_to_hbm [thread:$0]  (%p1838_p5), %s1409_s25, 128, %s1406_s16, %s1394_s17  }
 0x6be PF: > { %p1590_p13 = scmp.ge.s32.totalorder %s1712_s30, 2  ;;  %s1420_s1 = sand.u32 1, %s1700_s27  }
 0x6bf   : > { %s1421_s21 = scalar_lea.sflag [#allocation5], %s1420_s1 }
 0x6c0   : > { %p1587_p0 = pnand %p1590_p13, %p1842_p6 }
 0x6c2   : > { %p1588_p1 = pneg %p1587_p0 }
 0x6c4   : > { %1695 = dma.done.wait (%p1588_p1), %s1421_s21, 128  }
 0x6c5   : > { %1697 = vsyncadd (%p1588_p1), %s1421_s21, 4294967168  ;;  %p25_p2 = scmp.ge.s32.totalorder %s1825_s15, 4   ;;  %s2309_s27 = smov %s1704_s28 }
 0x6c6   : > { %s2310_s28 = smov %s1708_s29  ;;  %s2311_s29 = smov %s1836_s18 }
 0x6c7   : > { %s2312_s30 = smov %s1825_s15  ;;  %27 = sbr.rel (!%p25_p2) target bundleno = 7 (0x7), region = 107 }
 0x6cc   :  { %1426 = vsyncpa [#allocation5], 1 }
 0x6cd   :  { %1428 = vsyncpa [#allocation5 + $0x1], 1 }

</bundles_post_ra>
